<compile_context>
chip_gen: v6e
topology: v6e:2x2x1
jax: 0.10.0
libtpu: 0.0.40
codegen_flags: <defaults>
</compile_context>

<pallas_src>
import jax
import jax.numpy as jnp
from jax import lax
from jax.experimental import pallas as pl
from jax.experimental.pallas import tpu as pltpu


def _gmf_kernel(uid_ref, iid_ref,          # scalar-prefetch ids (SMEM)
                utab_ref, itab_ref,        # embedding tables (HBM, pl.ANY)
                w_ref, b_ref,              # (1, D) weight row VMEM, (1,) bias SMEM
                o_ref,                     # (1, TB) lane-dense output tile
                ubuf, ibuf, sem):          # VMEM gather buffers + DMA semaphores
    TB, D = ubuf.shape
    t = pl.program_id(0)
    base = t * TB

    # Issue 2*TB row-gather DMAs (HBM -> VMEM), one per (user, item) id.
    def _issue(r, carry):
        u_row = uid_ref[base + r]
        i_row = iid_ref[base + r]
        pltpu.make_async_copy(utab_ref.at[pl.ds(u_row, 1)],
                              ubuf.at[pl.ds(r, 1)], sem.at[0]).start()
        pltpu.make_async_copy(itab_ref.at[pl.ds(i_row, 1)],
                              ibuf.at[pl.ds(r, 1)], sem.at[1]).start()
        return carry

    lax.fori_loop(0, TB, _issue, 0)

    # Wait for all row copies (descriptor only needs to match the copy size).
    def _wait(r, carry):
        pltpu.make_async_copy(utab_ref.at[pl.ds(0, 1)],
                              ubuf.at[pl.ds(r, 1)], sem.at[0]).wait()
        pltpu.make_async_copy(itab_ref.at[pl.ds(0, 1)],
                              ibuf.at[pl.ds(r, 1)], sem.at[1]).wait()
        return carry

    lax.fori_loop(0, TB, _wait, 0)

    # GMF: elementwise product with the fused weight row, reduce over D.
    prod = ubuf[...] * ibuf[...] * w_ref[...]        # (TB, D) * (1, D)
    row = jnp.sum(prod, axis=-1)                     # (TB,)
    o_ref[...] = jnp.reshape(row, (1, TB)) + b_ref[0]  # lane-dense (1, TB)


def gmf_forward(user_id, item_id, user_table, item_table, w_row, b, *,
                tile_b=128):
    """user_id/item_id: (B,) int; returns (B,) float32 (matches .reshape(-1))."""
    B = user_id.shape[0]
    D = user_table.shape[1]
    num_tiles = -(-B // tile_b)
    b_pad = num_tiles * tile_b

    # Pad ids with 0 (a valid row); padded lanes are discarded after the call.
    uid = jnp.zeros((b_pad,), jnp.int32).at[:B].set(user_id.astype(jnp.int32))
    iid = jnp.zeros((b_pad,), jnp.int32).at[:B].set(item_id.astype(jnp.int32))

    grid_spec = pltpu.PrefetchScalarGridSpec(
        num_scalar_prefetch=2,
        grid=(num_tiles,),
        in_specs=[
            pl.BlockSpec(memory_space=pl.ANY),                   # user table (HBM)
            pl.BlockSpec(memory_space=pl.ANY),                   # item table (HBM)
            pl.BlockSpec(memory_space=pltpu.MemorySpace.VMEM),   # w row (1, D)
            pl.BlockSpec(memory_space=pltpu.MemorySpace.SMEM),   # bias (1,)
        ],
        out_specs=pl.BlockSpec((1, tile_b), lambda t, uid, iid: (t, 0)),
        scratch_shapes=[
            pltpu.VMEM((tile_b, D), jnp.float32),   # gathered user rows
            pltpu.VMEM((tile_b, D), jnp.float32),   # gathered item rows
            pltpu.SemaphoreType.DMA((2,)),
        ],
    )

    out = pl.pallas_call(
        _gmf_kernel,
        out_shape=jax.ShapeDtypeStruct((num_tiles, tile_b), jnp.float32),
        grid_spec=grid_spec,
        compiler_params=pltpu.CompilerParams(
            dimension_semantics=("parallel",)),
    )(uid, iid,
      user_table.astype(jnp.float32), item_table.astype(jnp.float32),
      w_row.astype(jnp.float32), b.astype(jnp.float32))

    return out.reshape(-1)[:B]


def init_gmf_params(key, n_users, m_items, latent_dim):
    """Deterministic init matching the PyTorch module's __init__ semantics."""
    k_u, k_i, k_w, k_b = jax.random.split(key, 4)
    # Embeddings: normal(std=0.01)
    user_table = 0.01 * jax.random.normal(k_u, (n_users, latent_dim), jnp.float32)
    item_table = 0.01 * jax.random.normal(k_i, (m_items, latent_dim), jnp.float32)
    # Linear(latent_dim, 1): PyTorch default uniform(-1/sqrt(D), 1/sqrt(D)).
    # PyTorch stores weight as (1, latent_dim); keep that row layout directly.
    bound = 1.0 / (latent_dim ** 0.5)
    w_row = jax.random.uniform(k_w, (1, latent_dim), jnp.float32, -bound, bound)
    b = jax.random.uniform(k_b, (1,), jnp.float32, -bound, bound)
    return user_table, item_table, w_row, b


if __name__ == "__main__":
    n_users, m_items, latent_dim, batch = 10, 12, 32, 8

    key = jax.random.PRNGKey(0)
    k_params, k_uid, k_iid = jax.random.split(key, 3)

    user_table, item_table, w_row, b = init_gmf_params(
        k_params, n_users, m_items, latent_dim)

    user_id = jax.random.randint(k_uid, (batch,), 0, n_users, jnp.int32)
    item_id = jax.random.randint(k_iid, (batch,), 0, m_items, jnp.int32)

    out = gmf_forward(user_id, item_id, user_table, item_table, w_row, b)
    out = jax.block_until_ready(out)

    # Pure-JAX reference of the PyTorch forward.
    u_emb = user_table[user_id]
    i_emb = item_table[item_id]
    ref = jnp.sum(u_emb * i_emb * w_row, axis=-1) + b[0]

    assert out.shape == (batch,), out.shape
    assert jnp.allclose(out, ref, atol=1e-5, rtol=1e-5), (out, ref)
    print("KERNEL_OK")
</pallas_src>

<mosaic_0001>
module attributes {stable_mosaic.version = 11 : i64} {
  func.func @_gmf_kernel(%arg0: i32, %arg1: memref<128xi32, #tpu.memory_space<smem>>, %arg2: memref<128xi32, #tpu.memory_space<smem>>, %arg3: memref<10x32xf32, #tpu.memory_space<any>>, %arg4: memref<12x32xf32, #tpu.memory_space<any>>, %arg5: memref<1x32xf32, #tpu.memory_space<vmem>>, %arg6: memref<1xf32, #tpu.memory_space<smem>>, %arg7: memref<1x128xf32, #tpu.memory_space<vmem>>, %arg8: memref<128x32xf32, #tpu.memory_space<vmem>>, %arg9: memref<128x32xf32, #tpu.memory_space<vmem>>, %arg10: memref<2x!tpu.dma_semaphore, #tpu.memory_space<semaphore_mem>>) attributes {dimension_semantics = [#tpu.dimension_semantics<parallel>], iteration_bounds = array<i64: 1>, scalar_prefetch = 2 : i64, scratch_operands = 3 : i64, tpu.core_type = #tpu.core_type<tc>, window_params = [{}, {}, {pipeline_mode = #tpu.pipeline_mode<synchronous>, transform_indices = @transform_2, window_bounds = array<i64: 1, 32>}, {transform_indices = @transform_3, window_bounds = array<i64: 1>}, {transform_indices = @transform_4, window_bounds = array<i64: 1, 128>}]} {
    %c128_i32 = arith.constant 128 : i32
    %0 = arith.muli %arg0, %c128_i32 : i32
    %c0_i32 = arith.constant 0 : i32
    %c128_i32_0 = arith.constant 128 : i32
    %1 = arith.addi %c0_i32, %c128_i32_0 : i32
    %c1_i32 = arith.constant 1 : i32
    scf.for %arg11 = %c0_i32 to %1 step %c1_i32  : i32 {
      %15 = arith.addi %0, %arg11 : i32
      %16 = arith.index_cast %15 : i32 to index
      %17 = memref.load %arg1[%16] : memref<128xi32, #tpu.memory_space<smem>>
      %18 = arith.addi %0, %arg11 : i32
      %19 = arith.index_cast %18 : i32 to index
      %20 = memref.load %arg2[%19] : memref<128xi32, #tpu.memory_space<smem>>
      %c0_i32_14 = arith.constant 0 : i32
      %c0_i32_15 = arith.constant 0 : i32
      %21 = tpu.memref_slice %arg3[%17, %c0_i32_15] : memref<10x32xf32, #tpu.memory_space<any>> -> memref<1x32xf32, #tpu.memory_space<any>>
      %c0_i32_16 = arith.constant 0 : i32
      %22 = tpu.memref_slice %arg8[%arg11, %c0_i32_16] : memref<128x32xf32, #tpu.memory_space<vmem>> -> memref<1x32xf32, #tpu.memory_space<vmem>>
      %23 = tpu.memref_slice %arg10[%c0_i32_14] : memref<2x!tpu.dma_semaphore, #tpu.memory_space<semaphore_mem>> -> memref<1x!tpu.dma_semaphore, #tpu.memory_space<semaphore_mem>>
      %24 = tpu.memref_squeeze %23 : memref<1x!tpu.dma_semaphore, #tpu.memory_space<semaphore_mem>> -> memref<!tpu.dma_semaphore, #tpu.memory_space<semaphore_mem>>
      tpu.enqueue_dma source(%21 : memref<1x32xf32, #tpu.memory_space<any>>) target(%22 : memref<1x32xf32, #tpu.memory_space<vmem>>) target_semaphore(%24 : memref<!tpu.dma_semaphore, #tpu.memory_space<semaphore_mem>>)
      %c1_i32_17 = arith.constant 1 : i32
      %c0_i32_18 = arith.constant 0 : i32
      %25 = tpu.memref_slice %arg4[%20, %c0_i32_18] : memref<12x32xf32, #tpu.memory_space<any>> -> memref<1x32xf32, #tpu.memory_space<any>>
      %c0_i32_19 = arith.constant 0 : i32
      %26 = tpu.memref_slice %arg9[%arg11, %c0_i32_19] : memref<128x32xf32, #tpu.memory_space<vmem>> -> memref<1x32xf32, #tpu.memory_space<vmem>>
      %27 = tpu.memref_slice %arg10[%c1_i32_17] : memref<2x!tpu.dma_semaphore, #tpu.memory_space<semaphore_mem>> -> memref<1x!tpu.dma_semaphore, #tpu.memory_space<semaphore_mem>>
      %28 = tpu.memref_squeeze %27 : memref<1x!tpu.dma_semaphore, #tpu.memory_space<semaphore_mem>> -> memref<!tpu.dma_semaphore, #tpu.memory_space<semaphore_mem>>
      tpu.enqueue_dma source(%25 : memref<1x32xf32, #tpu.memory_space<any>>) target(%26 : memref<1x32xf32, #tpu.memory_space<vmem>>) target_semaphore(%28 : memref<!tpu.dma_semaphore, #tpu.memory_space<semaphore_mem>>)
    }
    %c128_i32_1 = arith.constant 128 : i32
    %c0_i32_2 = arith.constant 0 : i32
    %c128_i32_3 = arith.constant 128 : i32
    %2 = arith.addi %c0_i32_2, %c128_i32_3 : i32
    %c1_i32_4 = arith.constant 1 : i32
    scf.for %arg11 = %c0_i32_2 to %2 step %c1_i32_4  : i32 {
      %c0_i32_14 = arith.constant 0 : i32
      %c0_i32_15 = arith.constant 0 : i32
      %c0_i32_16 = arith.constant 0 : i32
      %15 = tpu.memref_slice %arg3[%c0_i32_15, %c0_i32_16] : memref<10x32xf32, #tpu.memory_space<any>> -> memref<1x32xf32, #tpu.memory_space<any>>
      %c0_i32_17 = arith.constant 0 : i32
      %16 = tpu.memref_slice %arg8[%arg11, %c0_i32_17] : memref<128x32xf32, #tpu.memory_space<vmem>> -> memref<1x32xf32, #tpu.memory_space<vmem>>
      %17 = tpu.memref_slice %arg10[%c0_i32_14] : memref<2x!tpu.dma_semaphore, #tpu.memory_space<semaphore_mem>> -> memref<1x!tpu.dma_semaphore, #tpu.memory_space<semaphore_mem>>
      %18 = tpu.memref_squeeze %17 : memref<1x!tpu.dma_semaphore, #tpu.memory_space<semaphore_mem>> -> memref<!tpu.dma_semaphore, #tpu.memory_space<semaphore_mem>>
      tpu.wait_dma2 semaphore(%18 : memref<!tpu.dma_semaphore, #tpu.memory_space<semaphore_mem>>) src(%15 : memref<1x32xf32, #tpu.memory_space<any>>) dst(%16 : memref<1x32xf32, #tpu.memory_space<vmem>>)
      %c1_i32_18 = arith.constant 1 : i32
      %c0_i32_19 = arith.constant 0 : i32
      %c0_i32_20 = arith.constant 0 : i32
      %19 = tpu.memref_slice %arg4[%c0_i32_19, %c0_i32_20] : memref<12x32xf32, #tpu.memory_space<any>> -> memref<1x32xf32, #tpu.memory_space<any>>
      %c0_i32_21 = arith.constant 0 : i32
      %20 = tpu.memref_slice %arg9[%arg11, %c0_i32_21] : memref<128x32xf32, #tpu.memory_space<vmem>> -> memref<1x32xf32, #tpu.memory_space<vmem>>
      %21 = tpu.memref_slice %arg10[%c1_i32_18] : memref<2x!tpu.dma_semaphore, #tpu.memory_space<semaphore_mem>> -> memref<1x!tpu.dma_semaphore, #tpu.memory_space<semaphore_mem>>
      %22 = tpu.memref_squeeze %21 : memref<1x!tpu.dma_semaphore, #tpu.memory_space<semaphore_mem>> -> memref<!tpu.dma_semaphore, #tpu.memory_space<semaphore_mem>>
      tpu.wait_dma2 semaphore(%22 : memref<!tpu.dma_semaphore, #tpu.memory_space<semaphore_mem>>) src(%19 : memref<1x32xf32, #tpu.memory_space<any>>) dst(%20 : memref<1x32xf32, #tpu.memory_space<vmem>>)
    }
    %c128_i32_5 = arith.constant 128 : i32
    %c0 = arith.constant 0 : index
    %c0_6 = arith.constant 0 : index
    %3 = vector.load %arg8[%c0, %c0_6] : memref<128x32xf32, #tpu.memory_space<vmem>>, vector<128x32xf32>
    %c0_7 = arith.constant 0 : index
    %c0_8 = arith.constant 0 : index
    %4 = vector.load %arg9[%c0_7, %c0_8] : memref<128x32xf32, #tpu.memory_space<vmem>>, vector<128x32xf32>
    %5 = arith.mulf %3, %4 : vector<128x32xf32>
    %c0_9 = arith.constant 0 : index
    %c0_10 = arith.constant 0 : index
    %6 = vector.load %arg5[%c0_9, %c0_10] : memref<1x32xf32, #tpu.memory_space<vmem>>, vector<1x32xf32>
    %7 = vector.broadcast %6 : vector<1x32xf32> to vector<128x32xf32>
    %8 = arith.mulf %5, %7 : vector<128x32xf32>
    %cst = arith.constant dense<0.000000e+00> : vector<128xf32>
    %9 = vector.multi_reduction <add>, %8, %cst [1] : vector<128x32xf32> to vector<128xf32>
    %10 = vector.shape_cast %9 : vector<128xf32> to vector<1x128xf32>
    %c0_11 = arith.constant 0 : index
    %11 = memref.load %arg6[%c0_11] : memref<1xf32, #tpu.memory_space<smem>>
    %12 = vector.broadcast %11 : f32 to vector<1x128xf32>
    %13 = arith.addf %10, %12 : vector<1x128xf32>
    %c0_12 = arith.constant 0 : index
    %c0_13 = arith.constant 0 : index
    %14 = vector.load %arg7[%c0_12, %c0_13] : memref<1x128xf32, #tpu.memory_space<vmem>>, vector<1x128xf32>
    tpu.vector_store %arg7[%c0_12, %c0_13], %13 {strides = array<i32>} : memref<1x128xf32, #tpu.memory_space<vmem>>, vector<1x128xf32>,
    return
  }
  func.func @transform_2(%arg0: i32, %arg1: memref<128xi32, #tpu.memory_space<smem>>, %arg2: memref<128xi32, #tpu.memory_space<smem>>) -> (i32, i32) {
    %c0_i32 = arith.constant 0 : i32
    %c0_i32_0 = arith.constant 0 : i32
    %c0_i32_1 = arith.constant 0 : i32
    return %c0_i32, %c0_i32_0 : i32, i32
  }
  func.func @transform_3(%arg0: i32, %arg1: memref<128xi32, #tpu.memory_space<smem>>, %arg2: memref<128xi32, #tpu.memory_space<smem>>) -> i32 {
    %c0_i32 = arith.constant 0 : i32
    %c0_i32_0 = arith.constant 0 : i32
    return %c0_i32 : i32
  }
  func.func @transform_4(%arg0: i32, %arg1: memref<128xi32, #tpu.memory_space<smem>>, %arg2: memref<128xi32, #tpu.memory_space<smem>>) -> (i32, i32) {
    %c0_i32 = arith.constant 0 : i32
    %c0_i32_0 = arith.constant 0 : i32
    return %arg0, %c0_i32 : i32, i32
  }
}

</mosaic_0001>

<bundles_post_ra>
// kernel: tpu_custom_call.1
= control target key start
LH: loop header
LB: loop body
LE: loop exit
PB: predicated region body
PF: predicated region fallthrough
CT: control target
= control target key end

     0   :  { %s707_s0 = inlined_call_operand.vmem [shape: s32[128], index: 0, kind: input, shape index: {}]   ;;  %s708_s2 = inlined_call_operand.hbm [shape: f32[10,32], index: 2, kind: input, shape index: {}]   ;;  %s709_s3 = inlined_call_operand.hbm [shape: f32[12,32], index: 3, kind: input, shape index: {}]   ;;  %s710_s4 = inlined_call_operand.vmem [shape: f32[1,32], index: 4, kind: input, shape index: {}]   ;;  %s711_s6 = inlined_call_operand.hbm [shape: f32[1,128], index: 6, kind: output, shape index: {}]   ;;  %s712_s1 = inlined_call_operand.vmem [shape: s32[128], index: 1, kind: input, shape index: {}]   ;;  %s713_s5 = inlined_call_operand.<no memory space> [shape: f32[1], index: 5, kind: input, shape index: {}]  }
   0x1   :  { %s11_s23 = sshll.u32 %s707_s0, 4  ;;  %s15_s26 = sshll.u32 %s712_s1, 4  ;;  %s12_s23 = int_to_ptr.vmem [resolvable:$true] %s11_s23  ;;  %s16_s26 = int_to_ptr.vmem [resolvable:$true] %s15_s26 }
   0x2   :  { %s412_s27 = scalar_lea.vmem %s12_s23, 16  ;;  %p417_p1 = scmp.lt.s32.totalorder %s12_s23, %s12_s23 }
   0x3   :  { %p413_p0 = scmp.ne.s32.totalorder %s12_s23, %s412_s27  ;;  %p418_p2 = scmp.lt.s32.totalorder %s412_s27, %s412_s27 }
   0x5   :  { %p419_p3 = por %p418_p2, %p417_p1 }
   0x7   :  { %p420_p4 = pnand %p419_p3, %p413_p0 }
   0x9   :  { %423 = shalt.err (!%p420_p4)  }
   0xa   :  { %s524_s28 = smov [#allocation6]   ;;  %s424_s29 = scalar_lea.vmem %s16_s26, 16 }
   0xb   :  { %14 = dma.vmem_to_smem %s12_s23, 16, %s524_s28, [#allocation5] }
   0xc   :  { %p425_p5 = scmp.ne.s32.totalorder %s16_s26, %s424_s29  ;;  %p429_p6 = scmp.lt.s32.totalorder %s16_s26, %s16_s26 }
   0xd   :  { %p430_p7 = scmp.lt.s32.totalorder %s424_s29, %s424_s29 }
   0xf   :  { %p431_p8 = por %p430_p7, %p429_p6 }
  0x11   :  { %p432_p9 = pnand %p431_p8, %p425_p5 }
  0x13   :  { %435 = shalt.err (!%p432_p9)  }
  0x14   :  { %s525_s0 = smov [#allocation7]   ;;  %19 = sst [smem:[#allocation8]] %s713_s5 }
  0x15   :  { %18 = dma.vmem_to_smem %s16_s26, 16, %s525_s0, [#allocation5] }
  0x16   :  { %508 = dma.done.wait [#allocation5], 32 }
  0x17   :  { %509 = vsyncadd [#allocation5], 4294967264 }
  0x18   :  { %21 = sfence }
  0x19   :  { %22 = vsyncpa [#allocation10], 0  ;;  %s573_s7 = smov 0  }
  0x1a LB: > { %s35_s8 = sld [smem:[#allocation6 + %s518_s7]]  ;;  %s39_s5 = scalar_lea.vmem [#allocation2], %s518_s7  ;;  %s518_s7 = sphi %s573_s7, %s33_s7  }
  0x1b   : > { %s580_s9 = sld [smem:[#allocation7 + %s518_s7]]  ;;  %s47_s10 = sshll.u32 %s39_s5, 4  ;;  %s48_s10 = int_to_ptr.vmem [resolvable:$true] %s47_s10 }
  0x1c   : > { %s53_s11 = scalar_lea.vmem [#allocation3], %s518_s7  ;;  %s438_s21 = scalar_lea.hbm %s708_s2, 256 }
  0x1d   : > { %s62_s12 = sshll.u32 %s53_s11, 4  ;;  %s584_s12 = int_to_ptr.vmem [resolvable:$true] %s62_s12 }
  0x20   : > { %s388_s13 = sshll.u32 %s35_s8, 4 }
  0x21   : > { %s38_s16 = scalar_lea.hbm %s708_s2, %s388_s13  ;;  %s389_s17 = sshll.u32 %s580_s9, 4 }
  0x22   : > { %s436_s18 = scalar_lea.hbm %s38_s16, 16  ;;  %p439_p11 = scmp.lt.s32.totalorder %s38_s16, %s708_s2 }
  0x23   : > { %p437_p10 = scmp.ne.s32.totalorder %s38_s16, %s436_s18  ;;  %p440_p12 = scmp.lt.s32.totalorder %s438_s21, %s436_s18 }
  0x25   : > { %p441_p13 = por %p440_p12, %p439_p11 }
  0x27   : > { %p442_p0 = pnand %p441_p13, %p437_p10 }
  0x29   : > { %445 = shalt.err (!%p442_p0)  }
  0x2a   : > { %s446_s24 = scalar_lea.vmem %s48_s10, 16  ;;  %s526_s25 = smov [#allocation2]  }
  0x2b   : > { %p447_p1 = scmp.ne.s32.totalorder %s48_s10, %s446_s24  ;;  %s448_s26 = sshll.u32 %s526_s25, 4  ;;  %s449_s26 = int_to_ptr.vmem [resolvable:$false] %s448_s26 }
  0x2c   : > { %s450_s27 = scalar_lea.vmem %s449_s26, 2048  ;;  %p451_p2 = scmp.lt.s32.totalorder %s48_s10, %s449_s26 }
  0x2d   : > { %p452_p3 = scmp.lt.s32.totalorder %s450_s27, %s446_s24 }
  0x2f   : > { %p453_p4 = por %p452_p3, %p451_p2 }
  0x31   : > { %p454_p5 = pnand %p453_p4, %p447_p1 }
  0x33   : > { %457 = shalt.err (!%p454_p5)  }
  0x34   : > { %50 = dma.hbm_to_vmem [thread:$0]  %s38_s16, 16, %s48_s10, [#allocation4] }
  0x35   : > { %s52_s0 = scalar_lea.hbm %s709_s3, %s389_s17  ;;  %s460_s9 = scalar_lea.hbm %s709_s3, 256 }
  0x36   : > { %s458_s1 = scalar_lea.hbm %s52_s0, 16  ;;  %p461_p7 = scmp.lt.s32.totalorder %s52_s0, %s709_s3 }
  0x37   : > { %p459_p6 = scmp.ne.s32.totalorder %s52_s0, %s458_s1  ;;  %p462_p8 = scmp.lt.s32.totalorder %s460_s9, %s458_s1 }
  0x39   : > { %p463_p9 = por %p462_p8, %p461_p7 }
  0x3b   : > { %p464_p10 = pnand %p463_p9, %p459_p6 }
  0x3d   : > { %467 = shalt.err (!%p464_p10)  }
  0x3e   : > { %s468_s10 = scalar_lea.vmem %s584_s12, 16  ;;  %s527_s13 = smov [#allocation3]  }
  0x3f   : > { %p469_p11 = scmp.ne.s32.totalorder %s584_s12, %s468_s10  ;;  %s470_s14 = sshll.u32 %s527_s13, 4  ;;  %s471_s14 = int_to_ptr.vmem [resolvable:$false] %s470_s14 }
  0x40   : > { %s472_s15 = scalar_lea.vmem %s471_s14, 2048  ;;  %p473_p12 = scmp.lt.s32.totalorder %s584_s12, %s471_s14 }
  0x41   : > { %p474_p13 = scmp.lt.s32.totalorder %s472_s15, %s468_s10 }
  0x43   : > { %p475_p0 = por %p474_p13, %p473_p12 }
  0x45   : > { %p476_p1 = pnand %p475_p0, %p469_p11 }
  0x47   : > { %479 = shalt.err (!%p476_p1)  }
  0x48   : > { %65 = dma.hbm_to_vmem [thread:$0]  %s52_s0, 16, %s584_s12, [#allocation4 + $0x1] }
  0x49   : > { %s33_s7 = sadd.s32 1, %s518_s7  }
  0x4a   : > { %p30_p2 = scmp.ge.s32.totalorder %s33_s7, 128  }
  0x4b   :  { %s520_s16 = smov (%p30_p2), 0  }
  0x4c   :  { %32 = sbr.rel (!%p30_p2) target bundleno = 26 (0x1a), region = 57 }
  0x51 LB: > { %510 = dma.done.wait [#allocation4], 16  ;;  %s522_s16 = sphi %s520_s16, %s71_s16  }
  0x52   : > { %511 = vsyncadd [#allocation4], 4294967280 }
  0x53   : > { %512 = dma.done.wait [#allocation4 + $0x1], 16 }
  0x54   : > { %513 = vsyncadd [#allocation4 + $0x1], 4294967280  ;;  %s71_s16 = sadd.s32 1, %s522_s16  }
  0x55   : > { %p68_p3 = scmp.ge.s32.totalorder %s71_s16, 128  }
  0x56   :  { %v78_v0 = vld [vmem:[#allocation2] sm:$0xff] (%p68_p3)  ;;  %v80_v4 = vld [vmem:[#allocation2 + $0x10] sm:$0xff] (%p68_p3)  ;;  %v79_v6 = vld [vmem:[#allocation2 + $0x8] sm:$0xff] (%p68_p3)  ;;  %vm149_vm0 = vcmask (%p68_p3), 261120   ;;  %s198_s2 = sld [smem:[#allocation8]] (%p68_p3)  ;;  %vm243_vm1 = vcmask (%p68_p3), 130112  }
  0x57   :  { %70 = sbr.rel (!%p68_p3) target bundleno = 81 (0x51), region = 68  ;;  %v94_v1 = vld [vmem:[#allocation3] sm:$0xff] (%p68_p3)  ;;  %v96_v5 = vld [vmem:[#allocation3 + $0x10] sm:$0xff] (%p68_p3)  ;;  %v95_v8 = vld [vmem:[#allocation3 + $0x8] sm:$0xff] (%p68_p3)  ;;  %vm250_vm2 = vcmask (%p68_p3), 195712   ;;  %vm257_vm3 = vcmask (%p68_p3), 261312  }
  0x58   :  { %v615_v2 = vld [vmem:[%s710_s4] ss:$0 sm:$0xff] (%p68_p3)  ;;  %v110_v3 = vmul.f32 (%p68_p3), %v94_v1, %v78_v0  ;;  %v112_v7 = vmul.f32 (%p68_p3), %v96_v5, %v80_v4  ;;  %v81_v9 = vld [vmem:[#allocation2 + $0x18] sm:$0xff] (%p68_p3)  ;;  %v111_v12 = vmul.f32 (%p68_p3), %v95_v8, %v79_v6  ;;  %v83_v16 = vld [vmem:[#allocation2 + $0x28] sm:$0xff] (%p68_p3)  ;;  %vm264_vm4 = vcmask (%p68_p3), 326912   ;;  %s528_s3 = smov (%p68_p3), [#allocation9]  }
  0x59   :  { %v97_v10 = vld [vmem:[#allocation3 + $0x18] sm:$0xff] (%p68_p3)  ;;  %v82_v14 = vld [vmem:[#allocation2 + $0x20] sm:$0xff] (%p68_p3)  ;;  %v99_v19 = vld [vmem:[#allocation3 + $0x28] sm:$0xff] (%p68_p3)  ;;  %vm271_vm5 = vcmask (%p68_p3), 392512   ;;  %vm278_vm6 = vcmask (%p68_p3), 458112   ;;  %vm285_vm7 = vcmask (%p68_p3), 523712  }
  0x5a   :  { %v133_v11 = vmul.f32 (%p68_p3), %v615_v2, %v110_v3  ;;  %v113_v13 = vmul.f32 (%p68_p3), %v97_v10, %v81_v9  ;;  %v98_v15 = vld [vmem:[#allocation3 + $0x20] sm:$0xff] (%p68_p3)  ;;  %v135_v17 = vmul.f32 (%p68_p3), %v615_v2, %v112_v7  ;;  %v84_v20 = vld [vmem:[#allocation2 + $0x30] sm:$0xff] (%p68_p3)  ;;  %v134_v23 = vmul.f32 (%p68_p3), %v615_v2, %v111_v12  ;;  %v85_v26 = vld [vmem:[#allocation2 + $0x38] sm:$0xff] (%p68_p3)  ;;  %s351_s4 = sshll.u32 (%p68_p3), %s528_s3, 4  ;;  %s352_s4 = int_to_ptr.vmem [resolvable:$true] %s351_s4 }
  0x5b   :  { %v114_v18 = vmul.f32 (%p68_p3), %v98_v15, %v82_v14  ;;  %v100_v21 = vld [vmem:[#allocation3 + $0x30] sm:$0xff] (%p68_p3)  ;;  %v115_v25 = vmul.f32 (%p68_p3), %v99_v19, %v83_v16  ;;  %v101_v27 = vld [vmem:[#allocation3 + $0x38] sm:$0xff] (%p68_p3)  ;;  %v86_v35 = vld [vmem:[#allocation2 + $0x40] sm:$0xff] (%p68_p3)  ;;  %vm292_vm8 = vcmask (%p68_p3), 589312   ;;  %vm299_vm9 = vcmask (%p68_p3), 654912   ;;  %s480_s7 = scalar_lea.vmem (%p68_p3), %s352_s4, 16  ;;  %p485_p5 = scmp.lt.s32.totalorder (%p68_p3), %s352_s4, %s352_s4 }
  0x5c   :  { %v150_v22 = vsel %vm149_vm0, %v133_v11, 0.0  ;;  %v136_v24 = vmul.f32 %v615_v2, %v113_v13  ;;  %v156_v28 = vsel %vm149_vm0, %v135_v17, 0.0  ;;  %v153_v29 = vsel %vm149_vm0, %v134_v23, 0.0  ;;  %v102_v36 = vld [vmem:[#allocation3 + $0x40] sm:$0xff]  ;;  %v87_v37 = vld [vmem:[#allocation2 + $0x48] sm:$0xff]  ;;  %v88_v45 = vld [vmem:[#allocation2 + $0x50] sm:$0xff]  ;;  %p481_p4 = scmp.ne.s32.totalorder %s352_s4, %s480_s7 }
  0x5d   :  { %151 = vadd.xlane.f32.xlu0 %v150_v22  ;;  %157 = vadd.xlane.f32.xlu1 %v156_v28  ;;  %v137_v30 = vmul.f32 %v615_v2, %v114_v18  ;;  %v116_v31 = vmul.f32 %v100_v21, %v84_v20  ;;  %v138_v33 = vmul.f32 %v615_v2, %v115_v25  ;;  %v103_v38 = vld [vmem:[#allocation3 + $0x48] sm:$0xff]  ;;  %v104_v46 = vld [vmem:[#allocation3 + $0x50] sm:$0xff]  ;;  %v89_v47 = vld [vmem:[#allocation2 + $0x58] sm:$0xff]  ;;  %v232_v18 = vlaneseq  ;;  %s484_s18 = scalar_lea.vmem %s352_s4, 32 }
  0x5e   :  { %v159_v32 = vsel %vm149_vm0, %v136_v24, 0.0  ;;  %v117_v34 = vmul.f32 %v101_v27, %v85_v26  ;;  %v118_v41 = vmul.f32 %v102_v36, %v86_v35  ;;  %v119_v44 = vmul.f32 %v103_v38, %v87_v37  ;;  %v105_v48 = vld [vmem:[#allocation3 + $0x58] sm:$0xff]  ;;  %v90_v55 = vld [vmem:[#allocation2 + $0x60] sm:$0xff]  ;;  %v91_v57 = vld [vmem:[#allocation2 + $0x68] sm:$0xff]  ;;  %p486_p6 = scmp.lt.s32.totalorder %s484_s18, %s480_s7 }
  0x5f   :  { %v162_v39 = vsel %vm149_vm0, %v137_v30, 0.0  ;;  %v139_v40 = vmul.f32 %v615_v2, %v116_v31  ;;  %v165_v42 = vsel %vm149_vm0, %v138_v33, 0.0  ;;  %v120_v51 = vmul.f32 %v104_v46, %v88_v45  ;;  %v106_v56 = vld [vmem:[#allocation3 + $0x60] sm:$0xff]  ;;  %v107_v58 = vld [vmem:[#allocation3 + $0x68] sm:$0xff]  ;;  %v92_v1 = vld [vmem:[#allocation2 + $0x70] sm:$0xff] }
  0x60   :  { %v140_v43 = vmul.f32 %v615_v2, %v117_v34  ;;  %v141_v50 = vmul.f32 %v615_v2, %v118_v41  ;;  %v142_v53 = vmul.f32 %v615_v2, %v119_v44  ;;  %v121_v54 = vmul.f32 %v105_v48, %v89_v47  ;;  %v108_v3 = vld [vmem:[#allocation3 + $0x70] sm:$0xff]  ;;  %v93_v4 = vld [vmem:[#allocation2 + $0x78] sm:$0xff]  ;;  %p487_p7 = por %p486_p6, %p485_p5 }
  0x61   :  { %154 = vadd.xlane.f32.xlu0 %v153_v29  ;;  %160 = vadd.xlane.f32.xlu1 %v159_v32  ;;  %v168_v49 = vsel %vm149_vm0, %v139_v40, 0.0  ;;  %v143_v60 = vmul.f32 %v615_v2, %v120_v51  ;;  %v122_v61 = vmul.f32 %v106_v56, %v90_v55  ;;  %v123_v0 = vmul.f32 %v107_v58, %v91_v57  ;;  %v109_v5 = vld [vmem:[#allocation3 + $0x78] sm:$0xff] }
  0x62   :  { %v171_v52 = vsel %vm149_vm0, %v140_v43, 0.0  ;;  %v174_v59 = vsel %vm149_vm0, %v141_v50, 0.0  ;;  %v177_v62 = vsel %vm149_vm0, %v142_v53, 0.0  ;;  %v144_v63 = vmul.f32 %v615_v2, %v121_v54  ;;  %p488_p8 = pnand %p487_p7, %p481_p4 }
  0x63   :  { %v180_v6 = vsel %vm149_vm0, %v143_v60, 0.0  ;;  %v145_v7 = vmul.f32 %v615_v2, %v122_v61  ;;  %v124_v8 = vmul.f32 %v108_v3, %v92_v1  ;;  %v146_v10 = vmul.f32 %v615_v2, %v123_v0 }
  0x64   :  { %v183_v9 = vsel %vm149_vm0, %v144_v63, 0.0  ;;  %v125_v11 = vmul.f32 %v109_v5, %v93_v4  ;;  %v649_v19 = vand.u32 127, %v232_v18  ;;  %v651_v20 = vshrl.u32 %v232_v18, 7 }
  0x65   :  { %163 = vadd.xlane.f32.xlu0 %v162_v39  ;;  %166 = vadd.xlane.f32.xlu1 %v165_v42  ;;  %v186_v12 = vsel %vm149_vm0, %v145_v7, 0.0  ;;  %v147_v13 = vmul.f32 %v615_v2, %v124_v8  ;;  %v189_v14 = vsel %vm149_vm0, %v146_v10, 0.0  ;;  %v654_v22 = vstv %s198_s2 }
  0x66   :  { %v148_v15 = vmul.f32 %v615_v2, %v125_v11  ;;  %v238_v21 = vadd.s32 4294967288, %v649_v19  ;;  %v245_v2 = vadd.s32 4294967280, %v649_v19  ;;  %v252_v24 = vadd.s32 4294967272, %v649_v19 }
  0x67   :  { %v192_v16 = vsel %vm149_vm0, %v147_v13, 0.0  ;;  %v236_v26 = vsub.s32 %v649_v19, %v651_v20  ;;  %v259_v29 = vadd.s32 4294967264, %v649_v19  ;;  %v266_v34 = vadd.s32 4294967256, %v649_v19 }
  0x68   :  { %v195_v17 = vsel %vm149_vm0, %v148_v15, 0.0  ;;  %v241_v28 = vsub.s32 %v238_v21, %v651_v20  ;;  %v248_v30 = vsub.s32 %v245_v2, %v651_v20  ;;  %v255_v33 = vsub.s32 %v252_v24, %v651_v20 }
  0x69   :  { %169 = vadd.xlane.f32.xlu0 %v168_v49  ;;  %172 = vadd.xlane.f32.xlu1 %v171_v52  ;;  %v262_v40 = vsub.s32 %v259_v29, %v651_v20  ;;  %v273_v41 = vadd.s32 4294967248, %v649_v19  ;;  %v269_v45 = vsub.s32 %v266_v34, %v651_v20  ;;  %v280_v46 = vadd.s32 4294967240, %v649_v19 }
  0x6a   :  { %v287_v55 = vadd.s32 4294967232, %v649_v19  ;;  %v301_v3 = vadd.s32 4294967216, %v649_v19  ;;  %v308_v8 = vadd.s32 4294967208, %v649_v19  ;;  %v315_v15 = vadd.s32 4294967200, %v649_v19 }
  0x6b   :  { %v276_v54 = vsub.s32 %v273_v41, %v651_v20  ;;  %v283_v58 = vsub.s32 %v280_v46, %v651_v20  ;;  %vm306_vm10 = vcmask 720512   ;;  %v329_v29 = vadd.s32 4294967184, %v649_v19 }
  0x6c   :  { %v290_v1 = vsub.s32 %v287_v55, %v651_v20  ;;  %v311_v21 = vsub.s32 %v308_v8, %v651_v20  ;;  %v336_v34 = vadd.s32 4294967176, %v649_v19  ;;  %vm313_vm11 = vcmask 786112  }
  0x6d   :  { %175 = vadd.xlane.f32.xlu0 %v174_v59  ;;  %178 = vadd.xlane.f32.xlu1 %v177_v62  ;;  %v294_v59 = vadd.s32 4294967224, %v649_v19  ;;  %vm320_vm12 = vcmask 851712   ;;  %vm327_vm13 = vcmask 917312   ;;  %vm334_vm14 = vcmask 982912  }
  0x6e   :  { %vm341_vm15 = vcmask 1048512  }
  0x6f   :  { %v297_v7 = vsub.s32 %v294_v59, %v651_v20 }
  0x71   :  { %181 = vadd.xlane.f32.xlu0 %v180_v6  ;;  %184 = vadd.xlane.f32.xlu1 %v183_v9 }
  0x75   :  { %187 = vadd.xlane.f32.xlu0 %v186_v12  ;;  %190 = vadd.xlane.f32.xlu1 %v189_v14  ;;  %v304_v14 = vsub.s32 %v301_v3, %v651_v20 }
  0x79   :  { %193 = vadd.xlane.f32.xlu0 %v192_v16  ;;  %196 = vadd.xlane.f32.xlu1 %v195_v17 }
  0xe6   :  { %v152_v23 = vpop.xlane.xlu0 %151  ;;  %v158_v25 = vpop.xlane.xlu1 %157 }
  0xe7   :  { %v200_v27 = vadd.f32 %v654_v22, %v152_v23  ;;  %v202_v31 = vadd.f32 %v654_v22, %v158_v25  ;;  %v322_v23 = vadd.s32 4294967192, %v649_v19 }
  0xe9   :  { %v237_v38 = vrot.slane %v200_v27, %v236_v26  ;;  %v249_v42 = vrot.slane %v202_v31, %v248_v30 }
  0xea   :  { %v155_v32 = vpop.xlane.xlu0 %154  ;;  %v161_v36 = vpop.xlane.xlu1 %160 }
  0xeb   :  { %v201_v35 = vadd.f32 %v654_v22, %v155_v32  ;;  %v203_v37 = vadd.f32 %v654_v22, %v161_v36 }
  0xed   :  { %v242_v39 = vrot.slane %v201_v35, %v241_v28  ;;  %v256_v43 = vrot.slane %v203_v37, %v255_v33  ;;  %v318_v28 = vsub.s32 %v315_v15, %v651_v20  ;;  %v325_v33 = vsub.s32 %v322_v23, %v651_v20 }
  0xee   :  { %v164_v44 = vpop.xlane.xlu0 %163  ;;  %v167_v49 = vpop.xlane.xlu1 %166 }
  0xef   :  { %v244_v47 = vsel %vm243_vm1, %v242_v39, %v237_v38  ;;  %v204_v48 = vadd.f32 %v654_v22, %v164_v44  ;;  %v205_v51 = vadd.f32 %v654_v22, %v167_v49  ;;  %v339_v44 = vsub.s32 %v336_v34, %v651_v20 }
  0xf0   :  { %v251_v50 = vsel %vm250_vm2, %v249_v42, %v244_v47 }
  0xf1   :  { %v258_v52 = vsel %vm257_vm3, %v256_v43, %v251_v50  ;;  %v263_v53 = vrot.slane %v204_v48, %v262_v40  ;;  %v270_v56 = vrot.slane %v205_v51, %v269_v45  ;;  %v332_v40 = vsub.s32 %v329_v29, %v651_v20 }
  0xf2   :  { %v170_v57 = vpop.xlane.xlu0 %169  ;;  %v173_v62 = vpop.xlane.xlu1 %172 }
  0xf3   :  { %v265_v60 = vsel %vm264_vm4, %v263_v53, %v258_v52  ;;  %v206_v61 = vadd.f32 %v654_v22, %v170_v57  ;;  %v207_v63 = vadd.f32 %v654_v22, %v173_v62 }
  0xf4   :  { %v272_v4 = vsel %vm271_vm5, %v270_v56, %v265_v60 }
  0xf5   :  { %v277_v0 = vrot.slane %v206_v61, %v276_v54  ;;  %v284_v5 = vrot.slane %v207_v63, %v283_v58 }
  0xf6   :  { %v176_v6 = vpop.xlane.xlu0 %175  ;;  %v179_v11 = vpop.xlane.xlu1 %178 }
  0xf7   :  { %v279_v9 = vsel %vm278_vm6, %v277_v0, %v272_v4  ;;  %v208_v10 = vadd.f32 %v654_v22, %v176_v6  ;;  %v209_v12 = vadd.f32 %v654_v22, %v179_v11 }
  0xf8   :  { %v286_v16 = vsel %vm285_vm7, %v284_v5, %v279_v9 }
  0xf9   :  { %v291_v13 = vrot.slane %v208_v10, %v290_v1  ;;  %v298_v17 = vrot.slane %v209_v12, %v297_v7 }
  0xfa   :  { %v182_v18 = vpop.xlane.xlu0 %181  ;;  %v185_v25 = vpop.xlane.xlu1 %184 }
  0xfb   :  { %v293_v2 = vsel %vm292_vm8, %v291_v13, %v286_v16  ;;  %v210_v24 = vadd.f32 %v654_v22, %v182_v18  ;;  %v211_v26 = vadd.f32 %v654_v22, %v185_v25 }
  0xfc   :  { %v300_v30 = vsel %vm299_vm9, %v298_v17, %v293_v2 }
  0xfd   :  { %v305_v27 = vrot.slane %v210_v24, %v304_v14  ;;  %v312_v31 = vrot.slane %v211_v26, %v311_v21 }
  0xfe   :  { %v188_v32 = vpop.xlane.xlu0 %187  ;;  %v191_v37 = vpop.xlane.xlu1 %190 }
  0xff   :  { %v307_v35 = vsel %vm306_vm10, %v305_v27, %v300_v30  ;;  %v212_v36 = vadd.f32 %v654_v22, %v188_v32  ;;  %v213_v38 = vadd.f32 %v654_v22, %v191_v37 }
 0x100   :  { %v314_v41 = vsel %vm313_vm11, %v312_v31, %v307_v35 }
 0x101   :  { %v319_v39 = vrot.slane %v212_v36, %v318_v28  ;;  %v326_v42 = vrot.slane %v213_v38, %v325_v33 }
 0x102   :  { %v194_v43 = vpop.xlane.xlu0 %193  ;;  %v197_v19 = vpop.xlane.xlu1 %196 }
 0x103   :  { %v321_v45 = vsel %vm320_vm12, %v319_v39, %v314_v41  ;;  %v214_v46 = vadd.f32 %v654_v22, %v194_v43  ;;  %v215_v47 = vadd.f32 %v654_v22, %v197_v19 }
 0x104   :  { %v328_v50 = vsel %vm327_vm13, %v326_v42, %v321_v45 }
 0x105   :  { %v333_v48 = vrot.slane %v214_v46, %v332_v40  ;;  %v340_v49 = vrot.slane %v215_v47, %v339_v44 }
 0x107   :  { %v335_v51 = vsel %vm334_vm14, %v333_v48, %v328_v50 }
 0x108   :  { %v342_v52 = vsel %vm341_vm15, %v340_v49, %v335_v51 }
 0x109   :  { %344 = vst [vmem:[#allocation9] sm:$0x1] %v342_v52 }
 0x10a   :  { %491 = shalt.err (!%p488_p8)
}
 0x10b   :  { %354 = dma.vmem_to_hbm [thread:$0]  %s352_s4, 16, %s711_s6, [#allocation10]  }
 0x10c   :  { %514 = dma.done.wait [#allocation10], 16  }
 0x10d   :  { %515 = vsyncadd [#allocation10], 4294967280 }
 0x10e   :  { %358 = vsyncpa [#allocation10], 1 }
 0x10f   :  { %359 = vsyncmov [#allocation4] }
 0x112   :  { %s360_s21 = vpop.sfrf %359 }
 0x113   :  { %p391_p9 = scmp.ne.s32.totalorder %s360_s21, 0 }
 0x115   :  { %364 = shalt.err (%p391_p9)  }
 0x116   :  { %366 = vsyncmov [#allocation4 + $0x1] }
 0x119   :  { %s367_s22 = vpop.sfrf %366 }
 0x11a   :  { %p392_p10 = scmp.ne.s32.totalorder %s367_s22, 0 }
 0x11c   :  { %371 = shalt.err (%p392_p10)  }

</bundles_post_ra>
